<compile_context>
chip_gen: v7x
topology: tpu7x:2x2x1
jax: 0.10.0
libtpu: 0.0.40
codegen_flags: <defaults>
</compile_context>

<pallas_src>
import functools

import jax
import jax.numpy as jnp
import numpy as np
from jax.experimental import pallas as pl
from jax.experimental.pallas import tpu as pltpu


def _round_up(x, m):
    return ((x + m - 1) // m) * m


def _pick_rows_tile(rows, row_bytes, *, max_rows=1024, budget_bytes=8 << 20):
    """Largest multiple-of-8 row tile whose double-buffered working set fits budget."""
    cap = max(8, (budget_bytes // max(row_bytes, 1)) // 8 * 8)
    t = min(max_rows, cap, _round_up(max(rows, 1), 8))
    return max(8, (t // 8) * 8)


# ---------------------------------------------------------------------------
# Kernel 1: node-level precompute   hab = h @ [Wa | Wb]     -> [N, 2H]
# (the h[row]/h[col] blocks of edge_mlp's first Linear, hoisted out of the
#  per-edge loop and fused into a single [F, 2H] matmul)
# ---------------------------------------------------------------------------
def _node_precompute_kernel(h_ref, wab_ref, o_ref):
    o_ref[...] = jnp.dot(h_ref[...], wab_ref[...],
                         preferred_element_type=jnp.float32)


def node_precompute(h, wab):
    N, F = h.shape
    H2 = wab.shape[1]
    row_bytes = (F + 2 * H2) * 4 * 2          # in + out, double-buffered
    tn = _pick_rows_tile(N, row_bytes, max_rows=1024)
    Np = _round_up(N, tn)
    if Np != N:
        h = jnp.pad(h, ((0, Np - N), (0, 0)))
    out = pl.pallas_call(
        _node_precompute_kernel,
        out_shape=jax.ShapeDtypeStruct((Np, H2), jnp.float32),
        grid_spec=pltpu.PrefetchScalarGridSpec(
            num_scalar_prefetch=0,
            grid=(Np // tn,),
            in_specs=[
                pl.BlockSpec((tn, F), lambda n: (n, 0)),
                pl.BlockSpec((F, H2), lambda n: (0, 0)),   # resident weight
            ],
            out_specs=pl.BlockSpec((tn, H2), lambda n: (n, 0)),
        ),
        compiler_params=pltpu.CompilerParams(
            dimension_semantics=("parallel",)),
    )(h, wab)
    return out[:N]


# ---------------------------------------------------------------------------
# Kernel 2: fused per-edge compute (edge_mlp tail + coord_mlp + translation)
#   radial    = sum(cd^2)
#   m1        = relu(ha_i + hb_j + radial * wr + b_e1)
#   edge_feat = relu(m1 @ W_e2 + b_e2)
#   c1        = relu(edge_feat @ W_c1 + b_c1)
#   scale     = c1 . w_c2                (VPU mul + lane reduce, no MXU push)
#   trans     = clip(cd * scale, -100, 100)
# ---------------------------------------------------------------------------
def _edge_kernel(hai_ref, hbj_ref, cd_ref,
                 wr_ref, be1_ref, we2_ref, be2_ref,
                 wc1_ref, bc1_ref, wc2_ref,
                 ef_ref, tr_ref):
    cd = cd_ref[...]
    radial = jnp.sum(cd * cd, axis=-1, keepdims=True)            # [te, 1]
    pre1 = hai_ref[...] + hbj_ref[...] + radial * wr_ref[...] + be1_ref[...]
    m1 = jnp.maximum(pre1, 0.0)
    ef = jnp.maximum(
        jnp.dot(m1, we2_ref[...], preferred_element_type=jnp.float32)
        + be2_ref[...], 0.0)
    c1 = jnp.maximum(
        jnp.dot(ef, wc1_ref[...], preferred_element_type=jnp.float32)
        + bc1_ref[...], 0.0)
    # Linear(H, 1, bias=False): elementwise mul + cross-lane reduce (avoids a
    # 1-wide MXU matmul).  wc2_ref is the torch-layout [1, H] weight.
    scale = jnp.sum(c1 * wc2_ref[...], axis=-1, keepdims=True)   # [te, 1]
    tr = jnp.clip(cd * scale, -100.0, 100.0)
    ef_ref[...] = ef
    tr_ref[...] = tr


def edge_compute(hai, hbj, cd, wr, be1, we2, be2, wc1, bc1, wc2):
    E, H = hai.shape
    C = cd.shape[1]
    # hai + hbj + cd + ef + tr per row, double-buffered
    row_bytes = (3 * H + 2 * C) * 4 * 2
    te = _pick_rows_tile(E, row_bytes, max_rows=1024)
    Ep = _round_up(E, te)
    if Ep != E:
        pad = ((0, Ep - E), (0, 0))
        hai = jnp.pad(hai, pad)
        hbj = jnp.pad(hbj, pad)
        cd = jnp.pad(cd, pad)
    edge_h = pl.BlockSpec((te, H), lambda e: (e, 0))
    edge_c = pl.BlockSpec((te, C), lambda e: (e, 0))
    full = lambda shape: pl.BlockSpec(shape, lambda e: (0, 0))
    ef, tr = pl.pallas_call(
        _edge_kernel,
        out_shape=(
            jax.ShapeDtypeStruct((Ep, H), jnp.float32),
            jax.ShapeDtypeStruct((Ep, C), jnp.float32),
        ),
        grid_spec=pltpu.PrefetchScalarGridSpec(
            num_scalar_prefetch=0,
            grid=(Ep // te,),
            in_specs=[
                edge_h,          # ha[row]
                edge_h,          # hb[col]
                edge_c,          # coord_diff
                full((1, H)),    # wr   (radial row of W_e1)
                full((1, H)),    # b_e1
                full((H, H)),    # W_e2   (resident across grid)
                full((1, H)),    # b_e2
                full((H, H)),    # W_c1   (resident across grid)
                full((1, H)),    # b_c1
                full((1, H)),    # w_c2 (torch layout [1, H])
            ],
            out_specs=[edge_h, edge_c],
        ),
        compiler_params=pltpu.CompilerParams(
            dimension_semantics=("parallel",)),
    )(hai, hbj, cd, wr, be1, we2, be2, wc1, bc1, wc2)
    return ef[:E], tr[:E]


# ---------------------------------------------------------------------------
# Kernel 3: node MLP + recurrent residual
#   h_new = h + (relu(h @ Wn1_h + agg @ Wn1_a + b_n1) @ W_n2 + b_n2)
# ---------------------------------------------------------------------------
def _node_mlp_kernel(h_ref, agg_ref, wn1h_ref, wn1a_ref, bn1_ref,
                     wn2_ref, bn2_ref, o_ref):
    m = jnp.maximum(
        jnp.dot(h_ref[...], wn1h_ref[...], preferred_element_type=jnp.float32)
        + jnp.dot(agg_ref[...], wn1a_ref[...], preferred_element_type=jnp.float32)
        + bn1_ref[...], 0.0)
    out = jnp.dot(m, wn2_ref[...], preferred_element_type=jnp.float32) + bn2_ref[...]
    o_ref[...] = h_ref[...] + out        # recurrent=True residual


def node_mlp(h, agg, wn1h, wn1a, bn1, wn2, bn2):
    N, F = h.shape
    H = agg.shape[1]
    Fo = wn2.shape[1]
    assert Fo == F, "recurrent residual requires output_nf == input_nf"
    row_bytes = (2 * F + H) * 4 * 2
    tn = _pick_rows_tile(N, row_bytes, max_rows=1024)
    Np = _round_up(N, tn)
    if Np != N:
        h = jnp.pad(h, ((0, Np - N), (0, 0)))
        agg = jnp.pad(agg, ((0, Np - N), (0, 0)))
    full = lambda shape: pl.BlockSpec(shape, lambda n: (0, 0))
    out = pl.pallas_call(
        _node_mlp_kernel,
        out_shape=jax.ShapeDtypeStruct((Np, Fo), jnp.float32),
        grid_spec=pltpu.PrefetchScalarGridSpec(
            num_scalar_prefetch=0,
            grid=(Np // tn,),
            in_specs=[
                pl.BlockSpec((tn, F), lambda n: (n, 0)),
                pl.BlockSpec((tn, H), lambda n: (n, 0)),
                full((F, H)),
                full((H, H)),
                full((1, H)),
                full((H, Fo)),
                full((1, Fo)),
            ],
            out_specs=pl.BlockSpec((tn, Fo), lambda n: (n, 0)),
        ),
        compiler_params=pltpu.CompilerParams(
            dimension_semantics=("parallel",)),
    )(h, agg, wn1h, wn1a, bn1, wn2, bn2)
    return out[:N]


# ---------------------------------------------------------------------------
# Full E_GCL forward (glue: gathers, segment scatter-adds, coord update)
# ---------------------------------------------------------------------------
def e_gcl_forward(params, h, edge_index, coord, coords_weight=1.0):
    row, col = edge_index
    N = h.shape[0]
    H = params["b_e1"].shape[1]

    # coord2radial's gather/diff (glue); radial itself is computed in-kernel.
    cd = coord[row] - coord[col]                                   # [E, 3]

    # node-level precompute of the h[row]/h[col] halves of edge_mlp linear 0
    wab = jnp.concatenate([params["w_e1_a"], params["w_e1_b"]], axis=1)  # [F, 2H]
    hab = node_precompute(h, wab)                                  # [N, 2H]
    hai = hab[:, :H][row]                                          # gather (glue)
    hbj = hab[:, H:][col]

    # fused per-edge kernel
    edge_feat, trans = edge_compute(
        hai, hbj, cd,
        params["w_e1_r"], params["b_e1"],
        params["w_e2"], params["b_e2"],
        params["w_c1"], params["b_c1"], params["w_c2"],
    )

    # coord_model: unsorted_segment_mean over row (glue scatter)
    agg_t = jax.ops.segment_sum(trans, row, num_segments=N)
    cnt = jax.ops.segment_sum(jnp.ones((trans.shape[0],), jnp.float32), row,
                              num_segments=N)
    coord_new = coord + (agg_t / jnp.maximum(cnt, 1.0)[:, None]) * coords_weight

    # node_model: unsorted_segment_sum over row (glue scatter) + node MLP
    agg = jax.ops.segment_sum(edge_feat, row, num_segments=N)
    h_new = node_mlp(
        h, agg,
        params["w_n1_h"], params["w_n1_a"], params["b_n1"],
        params["w_n2"], params["b_n2"],
    )
    # dropout(p=0.0) -> identity
    return h_new, coord_new, None


# ---------------------------------------------------------------------------
# Pure-JAX reference (mirrors the PyTorch module with ReLU act, defaults)
# ---------------------------------------------------------------------------
def reference_forward(params, h, edge_index, coord, coords_weight=1.0):
    row, col = edge_index
    N = h.shape[0]
    cd = coord[row] - coord[col]
    radial = jnp.sum(cd ** 2, axis=1, keepdims=True)
    w_e1 = jnp.concatenate(
        [params["w_e1_a"], params["w_e1_b"], params["w_e1_r"]], axis=0)
    edge_in = jnp.concatenate([h[row], h[col], radial], axis=1)
    m1 = jax.nn.relu(edge_in @ w_e1 + params["b_e1"])
    edge_feat = jax.nn.relu(m1 @ params["w_e2"] + params["b_e2"])
    c1 = jax.nn.relu(edge_feat @ params["w_c1"] + params["b_c1"])
    scale = c1 @ params["w_c2"].T
    trans = jnp.clip(cd * scale, -100.0, 100.0)
    agg_t = jax.ops.segment_sum(trans, row, num_segments=N)
    cnt = jax.ops.segment_sum(jnp.ones_like(trans), row, num_segments=N)
    coord_new = coord + (agg_t / jnp.maximum(cnt, 1.0)) * coords_weight
    agg = jax.ops.segment_sum(edge_feat, row, num_segments=N)
    w_n1 = jnp.concatenate([params["w_n1_h"], params["w_n1_a"]], axis=0)
    node_in = jnp.concatenate([h, agg], axis=1)
    m = jax.nn.relu(node_in @ w_n1 + params["b_n1"])
    out = m @ params["w_n2"] + params["b_n2"]
    h_new = h + out
    return h_new, coord_new, None


def make_params(key, input_nf, hidden_nf, output_nf):
    F, H, Fo = input_nf, hidden_nf, output_nf
    ks = jax.random.split(key, 14)

    def init(k, shape, fan_in):
        lim = 1.0 / np.sqrt(fan_in)
        return jax.random.uniform(k, shape, jnp.float32, -lim, lim)

    fan_e1 = 2 * F + 1
    return {
        # edge_mlp Linear(2F+1, H), split into h[row] / h[col] / radial blocks
        "w_e1_a": init(ks[0], (F, H), fan_e1),
        "w_e1_b": init(ks[1], (F, H), fan_e1),
        "w_e1_r": init(ks[2], (1, H), fan_e1),
        "b_e1":   init(ks[3], (1, H), fan_e1),
        # edge_mlp Linear(H, H)
        "w_e2":   init(ks[4], (H, H), H),
        "b_e2":   init(ks[5], (1, H), H),
        # coord_mlp Linear(H, H) + Linear(H, 1, bias=False) (xavier*0.001 stand-in)
        "w_c1":   init(ks[6], (H, H), H),
        "b_c1":   init(ks[7], (1, H), H),
        "w_c2":   init(ks[8], (1, H), H) * 0.001,      # torch layout [out=1, in=H]
        # node_mlp Linear(F + H, H), split into h / agg blocks
        "w_n1_h": init(ks[9], (F, H), F + H),
        "w_n1_a": init(ks[10], (H, H), F + H),
        "b_n1":   init(ks[11], (1, H), F + H),
        # node_mlp Linear(H, Fo)
        "w_n2":   init(ks[12], (H, Fo), H),
        "b_n2":   init(ks[13], (1, Fo), H),
    }


if __name__ == "__main__":
    input_nf = 16
    hidden_nf = 32
    output_nf = 16
    N = 8     # nodes
    E = 16    # edges

    key = jax.random.PRNGKey(0)
    k_h, k_c, k_row, k_col, k_p = jax.random.split(key, 5)

    h = jax.random.normal(k_h, (N, input_nf), jnp.float32)
    coord = jax.random.normal(k_c, (N, 3), jnp.float32)
    row = jax.random.randint(k_row, (E,), 0, N, jnp.int32)
    col = jax.random.randint(k_col, (E,), 0, N, jnp.int32)

    params = make_params(k_p, input_nf, hidden_nf, output_nf)

    fwd = jax.jit(functools.partial(e_gcl_forward, coords_weight=1.0))
    h_new, coord_new, _ = fwd(params, h, (row, col), coord)
    jax.block_until_ready((h_new, coord_new))

    h_ref, coord_ref, _ = reference_forward(params, h, (row, col), coord)
    assert np.allclose(np.asarray(h_new), np.asarray(h_ref), atol=1e-4, rtol=1e-4)
    assert np.allclose(np.asarray(coord_new), np.asarray(coord_ref), atol=1e-4, rtol=1e-4)

    print("KERNEL_OK")
</pallas_src>

<mosaic_0001>
module attributes {stable_mosaic.version = 11 : i64} {
  func.func private @main(%arg0: i32) attributes {dimension_semantics = [#tpu.dimension_semantics<core_parallel>], iteration_bounds = array<i64: 2>, tpu.core_type = #tpu.core_type<sc_scalar_subcore>, window_params = []} {
    return
  }
}

module attributes {stable_mosaic.version = 11 : i64} {
  func.func private @main(%arg0: i32) attributes {dimension_semantics = [#tpu.dimension_semantics<core_parallel>], iteration_bounds = array<i64: 2>, tpu.core_type = #tpu.core_type<sc_scalar_subcore>, window_params = []} {
    return
  }
}

module attributes {stable_mosaic.version = 11 : i64} {
  func.func @_node_precompute_kernel(%arg0: i32, %arg1: memref<8x16xf32, #tpu.memory_space<vmem>>, %arg2: memref<16x64xf32, #tpu.memory_space<vmem>>, %arg3: memref<8x64xf32, #tpu.memory_space<vmem>>) attributes {dimension_semantics = [#tpu.dimension_semantics<parallel>], iteration_bounds = array<i64: 1>, scalar_prefetch = 0 : i64, scratch_operands = 0 : i64, tpu.core_type = #tpu.core_type<tc>, window_params = [{transform_indices = @transform_0, window_bounds = array<i64: 8, 16>}, {pipeline_mode = #tpu.pipeline_mode<synchronous>, transform_indices = @transform_1, window_bounds = array<i64: 16, 64>}, {transform_indices = @transform_2, window_bounds = array<i64: 8, 64>}]} {
    %c0 = arith.constant 0 : index
    %c0_0 = arith.constant 0 : index
    %0 = vector.load %arg1[%c0, %c0_0] : memref<8x16xf32, #tpu.memory_space<vmem>>, vector<8x16xf32>
    %c0_1 = arith.constant 0 : index
    %c0_2 = arith.constant 0 : index
    %1 = vector.load %arg2[%c0_1, %c0_2] : memref<16x64xf32, #tpu.memory_space<vmem>>, vector<16x64xf32>
    %cst = arith.constant dense<0.000000e+00> : vector<8x64xf32>
    %2 = tpu.matmul %0, %1, %cst {dimension_numbers = #tpu.dot_dimension_numbers<[1], [0], [0], [1], [0, 0, 1, 1], [], []>} : vector<8x16xf32>, vector<16x64xf32>, vector<8x64xf32> -> vector<8x64xf32>
    %c0_3 = arith.constant 0 : index
    %c0_4 = arith.constant 0 : index
    %3 = vector.load %arg3[%c0_3, %c0_4] : memref<8x64xf32, #tpu.memory_space<vmem>>, vector<8x64xf32>
    tpu.vector_store %arg3[%c0_3, %c0_4], %2 {strides = array<i32>} : memref<8x64xf32, #tpu.memory_space<vmem>>, vector<8x64xf32>,
    return
  }
  func.func @transform_0(%arg0: i32) -> (i32, i32) {
    %c0_i32 = arith.constant 0 : i32
    %c0_i32_0 = arith.constant 0 : i32
    return %arg0, %c0_i32 : i32, i32
  }
  func.func @transform_1(%arg0: i32) -> (i32, i32) {
    %c0_i32 = arith.constant 0 : i32
    %c0_i32_0 = arith.constant 0 : i32
    %c0_i32_1 = arith.constant 0 : i32
    return %c0_i32, %c0_i32_0 : i32, i32
  }
  func.func @transform_2(%arg0: i32) -> (i32, i32) {
    %c0_i32 = arith.constant 0 : i32
    %c0_i32_0 = arith.constant 0 : i32
    return %arg0, %c0_i32 : i32, i32
  }
}

module attributes {stable_mosaic.version = 11 : i64} {
  func.func @_edge_kernel(%arg0: i32, %arg1: memref<16x32xf32, #tpu.memory_space<vmem>>, %arg2: memref<16x32xf32, #tpu.memory_space<vmem>>, %arg3: memref<16x3xf32, #tpu.memory_space<vmem>>, %arg4: memref<1x32xf32, #tpu.memory_space<vmem>>, %arg5: memref<1x32xf32, #tpu.memory_space<vmem>>, %arg6: memref<32x32xf32, #tpu.memory_space<vmem>>, %arg7: memref<1x32xf32, #tpu.memory_space<vmem>>, %arg8: memref<32x32xf32, #tpu.memory_space<vmem>>, %arg9: memref<1x32xf32, #tpu.memory_space<vmem>>, %arg10: memref<1x32xf32, #tpu.memory_space<vmem>>, %arg11: memref<16x32xf32, #tpu.memory_space<vmem>>, %arg12: memref<16x3xf32, #tpu.memory_space<vmem>>) attributes {dimension_semantics = [#tpu.dimension_semantics<parallel>], iteration_bounds = array<i64: 1>, scalar_prefetch = 0 : i64, scratch_operands = 0 : i64, tpu.core_type = #tpu.core_type<tc>, window_params = [{transform_indices = @transform_0, window_bounds = array<i64: 16, 32>}, {transform_indices = @transform_1, window_bounds = array<i64: 16, 32>}, {transform_indices = @transform_2, window_bounds = array<i64: 16, 3>}, {pipeline_mode = #tpu.pipeline_mode<synchronous>, transform_indices = @transform_3, window_bounds = array<i64: 1, 32>}, {pipeline_mode = #tpu.pipeline_mode<synchronous>, transform_indices = @transform_4, window_bounds = array<i64: 1, 32>}, {pipeline_mode = #tpu.pipeline_mode<synchronous>, transform_indices = @transform_5, window_bounds = array<i64: 32, 32>}, {pipeline_mode = #tpu.pipeline_mode<synchronous>, transform_indices = @transform_6, window_bounds = array<i64: 1, 32>}, {pipeline_mode = #tpu.pipeline_mode<synchronous>, transform_indices = @transform_7, window_bounds = array<i64: 32, 32>}, {pipeline_mode = #tpu.pipeline_mode<synchronous>, transform_indices = @transform_8, window_bounds = array<i64: 1, 32>}, {pipeline_mode = #tpu.pipeline_mode<synchronous>, transform_indices = @transform_9, window_bounds = array<i64: 1, 32>}, {transform_indices = @transform_10, window_bounds = array<i64: 16, 32>}, {transform_indices = @transform_11, window_bounds = array<i64: 16, 3>}]} {
    %c0 = arith.constant 0 : index
    %c0_0 = arith.constant 0 : index
    %0 = vector.load %arg3[%c0, %c0_0] : memref<16x3xf32, #tpu.memory_space<vmem>>, vector<16x3xf32>
    %1 = arith.mulf %0, %0 : vector<16x3xf32>
    %cst = arith.constant dense<0.000000e+00> : vector<16xf32>
    %2 = vector.multi_reduction <add>, %1, %cst [1] : vector<16x3xf32> to vector<16xf32>
    %3 = vector.shape_cast %2 : vector<16xf32> to vector<16x1xf32>
    %c0_1 = arith.constant 0 : index
    %c0_2 = arith.constant 0 : index
    %4 = vector.load %arg1[%c0_1, %c0_2] : memref<16x32xf32, #tpu.memory_space<vmem>>, vector<16x32xf32>
    %c0_3 = arith.constant 0 : index
    %c0_4 = arith.constant 0 : index
    %5 = vector.load %arg2[%c0_3, %c0_4] : memref<16x32xf32, #tpu.memory_space<vmem>>, vector<16x32xf32>
    %6 = arith.addf %4, %5 : vector<16x32xf32>
    %c0_5 = arith.constant 0 : index
    %c0_6 = arith.constant 0 : index
    %7 = vector.load %arg4[%c0_5, %c0_6] : memref<1x32xf32, #tpu.memory_space<vmem>>, vector<1x32xf32>
    %8 = vector.broadcast %3 : vector<16x1xf32> to vector<16x32xf32>
    %9 = vector.broadcast %7 : vector<1x32xf32> to vector<16x32xf32>
    %10 = arith.mulf %8, %9 : vector<16x32xf32>
    %11 = arith.addf %6, %10 : vector<16x32xf32>
    %c0_7 = arith.constant 0 : index
    %c0_8 = arith.constant 0 : index
    %12 = vector.load %arg5[%c0_7, %c0_8] : memref<1x32xf32, #tpu.memory_space<vmem>>, vector<1x32xf32>
    %13 = vector.broadcast %12 : vector<1x32xf32> to vector<16x32xf32>
    %14 = arith.addf %11, %13 : vector<16x32xf32>
    %cst_9 = arith.constant 0.000000e+00 : f32
    %15 = vector.broadcast %cst_9 : f32 to vector<16x32xf32>
    %16 = arith.maximumf %14, %15 : vector<16x32xf32>
    %c0_10 = arith.constant 0 : index
    %c0_11 = arith.constant 0 : index
    %17 = vector.load %arg6[%c0_10, %c0_11] : memref<32x32xf32, #tpu.memory_space<vmem>>, vector<32x32xf32>
    %cst_12 = arith.constant dense<0.000000e+00> : vector<16x32xf32>
    %18 = tpu.matmul %16, %17, %cst_12 {dimension_numbers = #tpu.dot_dimension_numbers<[1], [0], [0], [1], [0, 0, 1, 1], [], []>} : vector<16x32xf32>, vector<32x32xf32>, vector<16x32xf32> -> vector<16x32xf32>
    %c0_13 = arith.constant 0 : index
    %c0_14 = arith.constant 0 : index
    %19 = vector.load %arg7[%c0_13, %c0_14] : memref<1x32xf32, #tpu.memory_space<vmem>>, vector<1x32xf32>
    %20 = vector.broadcast %19 : vector<1x32xf32> to vector<16x32xf32>
    %21 = arith.addf %18, %20 : vector<16x32xf32>
    %cst_15 = arith.constant 0.000000e+00 : f32
    %22 = vector.broadcast %cst_15 : f32 to vector<16x32xf32>
    %23 = arith.maximumf %21, %22 : vector<16x32xf32>
    %c0_16 = arith.constant 0 : index
    %c0_17 = arith.constant 0 : index
    %24 = vector.load %arg8[%c0_16, %c0_17] : memref<32x32xf32, #tpu.memory_space<vmem>>, vector<32x32xf32>
    %cst_18 = arith.constant dense<0.000000e+00> : vector<16x32xf32>
    %25 = tpu.matmul %23, %24, %cst_18 {dimension_numbers = #tpu.dot_dimension_numbers<[1], [0], [0], [1], [0, 0, 1, 1], [], []>} : vector<16x32xf32>, vector<32x32xf32>, vector<16x32xf32> -> vector<16x32xf32>
    %c0_19 = arith.constant 0 : index
    %c0_20 = arith.constant 0 : index
    %26 = vector.load %arg9[%c0_19, %c0_20] : memref<1x32xf32, #tpu.memory_space<vmem>>, vector<1x32xf32>
    %27 = vector.broadcast %26 : vector<1x32xf32> to vector<16x32xf32>
    %28 = arith.addf %25, %27 : vector<16x32xf32>
    %cst_21 = arith.constant 0.000000e+00 : f32
    %29 = vector.broadcast %cst_21 : f32 to vector<16x32xf32>
    %30 = arith.maximumf %28, %29 : vector<16x32xf32>
    %c0_22 = arith.constant 0 : index
    %c0_23 = arith.constant 0 : index
    %31 = vector.load %arg10[%c0_22, %c0_23] : memref<1x32xf32, #tpu.memory_space<vmem>>, vector<1x32xf32>
    %32 = vector.broadcast %31 : vector<1x32xf32> to vector<16x32xf32>
    %33 = arith.mulf %30, %32 : vector<16x32xf32>
    %cst_24 = arith.constant dense<0.000000e+00> : vector<16xf32>
    %34 = vector.multi_reduction <add>, %33, %cst_24 [1] : vector<16x32xf32> to vector<16xf32>
    %35 = vector.shape_cast %34 : vector<16xf32> to vector<16x1xf32>
    %36 = vector.broadcast %35 : vector<16x1xf32> to vector<16x3xf32>
    %37 = arith.mulf %0, %36 : vector<16x3xf32>
    %cst_25 = arith.constant -1.000000e+02 : f32
    %cst_26 = arith.constant 1.000000e+02 : f32
    %38 = vector.broadcast %cst_25 : f32 to vector<16x3xf32>
    %39 = arith.maximumf %38, %37 : vector<16x3xf32>
    %40 = vector.broadcast %cst_26 : f32 to vector<16x3xf32>
    %41 = arith.minimumf %40, %39 : vector<16x3xf32>
    %c0_27 = arith.constant 0 : index
    %c0_28 = arith.constant 0 : index
    %42 = vector.load %arg11[%c0_27, %c0_28] : memref<16x32xf32, #tpu.memory_space<vmem>>, vector<16x32xf32>
    tpu.vector_store %arg11[%c0_27, %c0_28], %23 {strides = array<i32>} : memref<16x32xf32, #tpu.memory_space<vmem>>, vector<16x32xf32>,
    %c0_29 = arith.constant 0 : index
    %c0_30 = arith.constant 0 : index
    %43 = vector.load %arg12[%c0_29, %c0_30] : memref<16x3xf32, #tpu.memory_space<vmem>>, vector<16x3xf32>
    tpu.vector_store %arg12[%c0_29, %c0_30], %41 {strides = array<i32>} : memref<16x3xf32, #tpu.memory_space<vmem>>, vector<16x3xf32>,
    return
  }
  func.func @transform_0(%arg0: i32) -> (i32, i32) {
    %c0_i32 = arith.constant 0 : i32
    %c0_i32_0 = arith.constant 0 : i32
    return %arg0, %c0_i32 : i32, i32
  }
  func.func @transform_1(%arg0: i32) -> (i32, i32) {
    %c0_i32 = arith.constant 0 : i32
    %c0_i32_0 = arith.constant 0 : i32
    return %arg0, %c0_i32 : i32, i32
  }
  func.func @transform_2(%arg0: i32) -> (i32, i32) {
    %c0_i32 = arith.constant 0 : i32
    %c0_i32_0 = arith.constant 0 : i32
    return %arg0, %c0_i32 : i32, i32
  }
  func.func @transform_3(%arg0: i32) -> (i32, i32) {
    %c0_i32 = arith.constant 0 : i32
    %c0_i32_0 = arith.constant 0 : i32
    %c0_i32_1 = arith.constant 0 : i32
    return %c0_i32, %c0_i32_0 : i32, i32
  }
  func.func @transform_4(%arg0: i32) -> (i32, i32) {
    %c0_i32 = arith.constant 0 : i32
    %c0_i32_0 = arith.constant 0 : i32
    %c0_i32_1 = arith.constant 0 : i32
    return %c0_i32, %c0_i32_0 : i32, i32
  }
  func.func @transform_5(%arg0: i32) -> (i32, i32) {
    %c0_i32 = arith.constant 0 : i32
    %c0_i32_0 = arith.constant 0 : i32
    %c0_i32_1 = arith.constant 0 : i32
    return %c0_i32, %c0_i32_0 : i32, i32
  }
  func.func @transform_6(%arg0: i32) -> (i32, i32) {
    %c0_i32 = arith.constant 0 : i32
    %c0_i32_0 = arith.constant 0 : i32
    %c0_i32_1 = arith.constant 0 : i32
    return %c0_i32, %c0_i32_0 : i32, i32
  }
  func.func @transform_7(%arg0: i32) -> (i32, i32) {
    %c0_i32 = arith.constant 0 : i32
    %c0_i32_0 = arith.constant 0 : i32
    %c0_i32_1 = arith.constant 0 : i32
    return %c0_i32, %c0_i32_0 : i32, i32
  }
  func.func @transform_8(%arg0: i32) -> (i32, i32) {
    %c0_i32 = arith.constant 0 : i32
    %c0_i32_0 = arith.constant 0 : i32
    %c0_i32_1 = arith.constant 0 : i32
    return %c0_i32, %c0_i32_0 : i32, i32
  }
  func.func @transform_9(%arg0: i32) -> (i32, i32) {
    %c0_i32 = arith.constant 0 : i32
    %c0_i32_0 = arith.constant 0 : i32
    %c0_i32_1 = arith.constant 0 : i32
    return %c0_i32, %c0_i32_0 : i32, i32
  }
  func.func @transform_10(%arg0: i32) -> (i32, i32) {
    %c0_i32 = arith.constant 0 : i32
    %c0_i32_0 = arith.constant 0 : i32
    return %arg0, %c0_i32 : i32, i32
  }
  func.func @transform_11(%arg0: i32) -> (i32, i32) {
    %c0_i32 = arith.constant 0 : i32
    %c0_i32_0 = arith.constant 0 : i32
    return %arg0, %c0_i32 : i32, i32
  }
}

module attributes {stable_mosaic.version = 11 : i64} {
  func.func @_node_mlp_kernel(%arg0: i32, %arg1: memref<8x16xf32, #tpu.memory_space<vmem>>, %arg2: memref<8x32xf32, #tpu.memory_space<vmem>>, %arg3: memref<16x32xf32, #tpu.memory_space<vmem>>, %arg4: memref<32x32xf32, #tpu.memory_space<vmem>>, %arg5: memref<1x32xf32, #tpu.memory_space<vmem>>, %arg6: memref<32x16xf32, #tpu.memory_space<vmem>>, %arg7: memref<1x16xf32, #tpu.memory_space<vmem>>, %arg8: memref<8x16xf32, #tpu.memory_space<vmem>>) attributes {dimension_semantics = [#tpu.dimension_semantics<parallel>], iteration_bounds = array<i64: 1>, scalar_prefetch = 0 : i64, scratch_operands = 0 : i64, tpu.core_type = #tpu.core_type<tc>, window_params = [{transform_indices = @transform_0, window_bounds = array<i64: 8, 16>}, {transform_indices = @transform_1, window_bounds = array<i64: 8, 32>}, {pipeline_mode = #tpu.pipeline_mode<synchronous>, transform_indices = @transform_2, window_bounds = array<i64: 16, 32>}, {pipeline_mode = #tpu.pipeline_mode<synchronous>, transform_indices = @transform_3, window_bounds = array<i64: 32, 32>}, {pipeline_mode = #tpu.pipeline_mode<synchronous>, transform_indices = @transform_4, window_bounds = array<i64: 1, 32>}, {pipeline_mode = #tpu.pipeline_mode<synchronous>, transform_indices = @transform_5, window_bounds = array<i64: 32, 16>}, {pipeline_mode = #tpu.pipeline_mode<synchronous>, transform_indices = @transform_6, window_bounds = array<i64: 1, 16>}, {transform_indices = @transform_7, window_bounds = array<i64: 8, 16>}]} {
    %c0 = arith.constant 0 : index
    %c0_0 = arith.constant 0 : index
    %0 = vector.load %arg1[%c0, %c0_0] : memref<8x16xf32, #tpu.memory_space<vmem>>, vector<8x16xf32>
    %c0_1 = arith.constant 0 : index
    %c0_2 = arith.constant 0 : index
    %1 = vector.load %arg3[%c0_1, %c0_2] : memref<16x32xf32, #tpu.memory_space<vmem>>, vector<16x32xf32>
    %cst = arith.constant dense<0.000000e+00> : vector<8x32xf32>
    %2 = tpu.matmul %0, %1, %cst {dimension_numbers = #tpu.dot_dimension_numbers<[1], [0], [0], [1], [0, 0, 1, 1], [], []>} : vector<8x16xf32>, vector<16x32xf32>, vector<8x32xf32> -> vector<8x32xf32>
    %c0_3 = arith.constant 0 : index
    %c0_4 = arith.constant 0 : index
    %3 = vector.load %arg2[%c0_3, %c0_4] : memref<8x32xf32, #tpu.memory_space<vmem>>, vector<8x32xf32>
    %c0_5 = arith.constant 0 : index
    %c0_6 = arith.constant 0 : index
    %4 = vector.load %arg4[%c0_5, %c0_6] : memref<32x32xf32, #tpu.memory_space<vmem>>, vector<32x32xf32>
    %cst_7 = arith.constant dense<0.000000e+00> : vector<8x32xf32>
    %5 = tpu.matmul %3, %4, %cst_7 {dimension_numbers = #tpu.dot_dimension_numbers<[1], [0], [0], [1], [0, 0, 1, 1], [], []>} : vector<8x32xf32>, vector<32x32xf32>, vector<8x32xf32> -> vector<8x32xf32>
    %6 = arith.addf %2, %5 : vector<8x32xf32>
    %c0_8 = arith.constant 0 : index
    %c0_9 = arith.constant 0 : index
    %7 = vector.load %arg5[%c0_8, %c0_9] : memref<1x32xf32, #tpu.memory_space<vmem>>, vector<1x32xf32>
    %8 = vector.broadcast %7 : vector<1x32xf32> to vector<8x32xf32>
    %9 = arith.addf %6, %8 : vector<8x32xf32>
    %cst_10 = arith.constant 0.000000e+00 : f32
    %10 = vector.broadcast %cst_10 : f32 to vector<8x32xf32>
    %11 = arith.maximumf %9, %10 : vector<8x32xf32>
    %c0_11 = arith.constant 0 : index
    %c0_12 = arith.constant 0 : index
    %12 = vector.load %arg6[%c0_11, %c0_12] : memref<32x16xf32, #tpu.memory_space<vmem>>, vector<32x16xf32>
    %cst_13 = arith.constant dense<0.000000e+00> : vector<8x16xf32>
    %13 = tpu.matmul %11, %12, %cst_13 {dimension_numbers = #tpu.dot_dimension_numbers<[1], [0], [0], [1], [0, 0, 1, 1], [], []>} : vector<8x32xf32>, vector<32x16xf32>, vector<8x16xf32> -> vector<8x16xf32>
    %c0_14 = arith.constant 0 : index
    %c0_15 = arith.constant 0 : index
    %14 = vector.load %arg7[%c0_14, %c0_15] : memref<1x16xf32, #tpu.memory_space<vmem>>, vector<1x16xf32>
    %15 = vector.broadcast %14 : vector<1x16xf32> to vector<8x16xf32>
    %16 = arith.addf %13, %15 : vector<8x16xf32>
    %c0_16 = arith.constant 0 : index
    %c0_17 = arith.constant 0 : index
    %17 = vector.load %arg1[%c0_16, %c0_17] : memref<8x16xf32, #tpu.memory_space<vmem>>, vector<8x16xf32>
    %18 = arith.addf %17, %16 : vector<8x16xf32>
    %c0_18 = arith.constant 0 : index
    %c0_19 = arith.constant 0 : index
    %19 = vector.load %arg8[%c0_18, %c0_19] : memref<8x16xf32, #tpu.memory_space<vmem>>, vector<8x16xf32>
    tpu.vector_store %arg8[%c0_18, %c0_19], %18 {strides = array<i32>} : memref<8x16xf32, #tpu.memory_space<vmem>>, vector<8x16xf32>,
    return
  }
  func.func @transform_0(%arg0: i32) -> (i32, i32) {
    %c0_i32 = arith.constant 0 : i32
    %c0_i32_0 = arith.constant 0 : i32
    return %arg0, %c0_i32 : i32, i32
  }
  func.func @transform_1(%arg0: i32) -> (i32, i32) {
    %c0_i32 = arith.constant 0 : i32
    %c0_i32_0 = arith.constant 0 : i32
    return %arg0, %c0_i32 : i32, i32
  }
  func.func @transform_2(%arg0: i32) -> (i32, i32) {
    %c0_i32 = arith.constant 0 : i32
    %c0_i32_0 = arith.constant 0 : i32
    %c0_i32_1 = arith.constant 0 : i32
    return %c0_i32, %c0_i32_0 : i32, i32
  }
  func.func @transform_3(%arg0: i32) -> (i32, i32) {
    %c0_i32 = arith.constant 0 : i32
    %c0_i32_0 = arith.constant 0 : i32
    %c0_i32_1 = arith.constant 0 : i32
    return %c0_i32, %c0_i32_0 : i32, i32
  }
  func.func @transform_4(%arg0: i32) -> (i32, i32) {
    %c0_i32 = arith.constant 0 : i32
    %c0_i32_0 = arith.constant 0 : i32
    %c0_i32_1 = arith.constant 0 : i32
    return %c0_i32, %c0_i32_0 : i32, i32
  }
  func.func @transform_5(%arg0: i32) -> (i32, i32) {
    %c0_i32 = arith.constant 0 : i32
    %c0_i32_0 = arith.constant 0 : i32
    %c0_i32_1 = arith.constant 0 : i32
    return %c0_i32, %c0_i32_0 : i32, i32
  }
  func.func @transform_6(%arg0: i32) -> (i32, i32) {
    %c0_i32 = arith.constant 0 : i32
    %c0_i32_0 = arith.constant 0 : i32
    %c0_i32_1 = arith.constant 0 : i32
    return %c0_i32, %c0_i32_0 : i32, i32
  }
  func.func @transform_7(%arg0: i32) -> (i32, i32) {
    %c0_i32 = arith.constant 0 : i32
    %c0_i32_0 = arith.constant 0 : i32
    return %arg0, %c0_i32 : i32, i32
  }
}

</mosaic_0001>

<bundles_post_ra>
// kernel: sub.1
= control target key start
LH: loop header
LB: loop body
LE: loop exit
PB: predicated region body
PF: predicated region fallthrough
CT: control target
= control target key end

     0   :  { %s56_s0 = inlined_call_operand.vmem [shape: f32[16,3], index: 0, kind: input, shape index: {}]   ;;  %s57_s1 = inlined_call_operand.vmem [shape: f32[16,3], index: 1, kind: input, shape index: {}]   ;;  %s58_s2 = inlined_call_operand.vmem [shape: f32[16,3], index: 2, kind: output, shape index: {}]  }
   0x1   :  { %v3_v0 = vld [vmem:[%s56_s0] sm:$0xff]  ;;  %v20_v2 = vld [vmem:[%s56_s0 + $0x8] sm:$0xff] }
   0x2   :  { %v4_v1 = vld [vmem:[%s57_s1] sm:$0xff]  ;;  %v21_v4 = vld [vmem:[%s57_s1 + $0x8] sm:$0xff] }
   0x3   :  { %v7_v3 = vsub.f32 %v3_v0, %v4_v1  ;;  %v16_v5 = vsub.f32 %v20_v2, %v21_v4 }
   0x5   :  { %9 = vst [vmem:[%s58_s2] sm:$0xff] %v7_v3  ;;  %22 = vst [vmem:[%s58_s2 + $0x8] sm:$0xff] %v16_v5 }

// kernel: e_gcl_forward.3
= control target key start
LH: loop header
LB: loop body
LE: loop exit
PB: predicated region body
PF: predicated region fallthrough
CT: control target
= control target key end

     0   :  { %v111_v0 = vmov 0.0|0.0   ;;  %vm112_vm0 = vmmov 0   ;;  %v113_v3 = vmov 0.0   ;;  %vm14_vm1 = vcmask 130048   ;;  %s141_s1 = inlined_call_operand.vmem [shape: f32[16,64], index: 1, kind: input, shape index: {}]   ;;  %s142_s0 = inlined_call_operand.vmem [shape: f32[8,16], index: 0, kind: input, shape index: {}]   ;;  %s143_s2 = inlined_call_operand.vmem [shape: f32[8,64], index: 2, kind: output, shape index: {}]  }
   0x1   :  { %105 = vmatprep.subr.bf16.mxu0 %v111_v0  ;;  %v12_v1 = vld [vmem:[%s141_s1] sm:$0xff]  ;;  %v13_v2 = vld [vmem:[%s141_s1 + $0x8] sm:$0xff]  ;;  %102 = vmatprep.mubr.msk.f32.mxu0 %vm112_vm0, %v113_v3  ;;  %vm88_vm2 = vcmask 523264  }
   0x2   :  { %v106_v4 = vpack.c.bf16 %v13_v2, %v12_v1  ;;  %v11_v5 = vld [vmem:[%s142_s0] sm:$0xff] }
   0x4   :  { %107 = vmatpush3.bf16.msra.mxu0 %v106_v4 }
   0x7   :  { %103 = vmatmul.mubr.msk.f32.vlgmr.msra.gmra.mrb[0].mxu0 %vm14_vm1, %v11_v5 }
  0xda   :  { %v84_v6 = vpop.f32.mrb[0].mxu0 }
  0xdb   :  { %89 = vst.msk [vmem:[%s143_s2] sm:$0xff] %vm88_vm2, %v84_v6  ;;  %v104_v7 = vpop.f32.mrb[1].mxu0 }

// kernel: e_gcl_forward.4
= control target key start
LH: loop header
LB: loop body
LE: loop exit
PB: predicated region body
PF: predicated region fallthrough
CT: control target
= control target key end

     0   :  { %vm41_vm0 = vcmask 23552   ;;  %vm87_vm1 = vcmask 261120   ;;  %s510_s2 = inlined_call_operand.vmem [shape: f32[16,3], index: 2, kind: input, shape index: {}]   ;;  %s511_s5 = inlined_call_operand.vmem [shape: f32[32,32], index: 5, kind: input, shape index: {}]   ;;  %s512_s7 = inlined_call_operand.vmem [shape: f32[32,32], index: 7, kind: input, shape index: {}]   ;;  %s513_s0 = inlined_call_operand.vmem [shape: f32[16,32], index: 0, kind: input, shape index: {}]   ;;  %s514_s1 = inlined_call_operand.vmem [shape: f32[16,32], index: 1, kind: input, shape index: {}]   ;;  %s515_s3 = inlined_call_operand.vmem [shape: f32[1,32], index: 3, kind: input, shape index: {}]   ;;  %s516_s4 = inlined_call_operand.vmem [shape: f32[1,32], index: 4, kind: input, shape index: {}]   ;;  %s517_s6 = inlined_call_operand.vmem [shape: f32[1,32], index: 6, kind: input, shape index: {}]   ;;  %s518_s10 = inlined_call_operand.vmem [shape: f32[16,32], index: 10, kind: output, shape index: {0}]   ;;  %s519_s8 = inlined_call_operand.vmem [shape: f32[1,32], index: 8, kind: input, shape index: {}]   ;;  %s520_s9 = inlined_call_operand.vmem [shape: f32[1,32], index: 9, kind: input, shape index: {}]   ;;  %s521_s11 = inlined_call_operand.vmem [shape: f32[16,3], index: 11, kind: output, shape index: {1}]  }
   0x1   :  { %v422_v0 = vld [vmem:[%s510_s2] sm:$0xff]  ;;  %v427_v1 = vld [vmem:[%s510_s2 + $0x8] sm:$0xff]  ;;  %v78_v9 = vld [vmem:[%s511_s5 + $0x10] sm:$0xff] }
   0x2   :  { %v39_v2 = vmul.f32 %v422_v0, %v422_v0  ;;  %v40_v3 = vmul.f32 %v427_v1, %v427_v1  ;;  %v76_v6 = vld [vmem:[%s511_s5] sm:$0xff]  ;;  %v77_v7 = vld [vmem:[%s511_s5 + $0x8] sm:$0xff]  ;;  %v79_v10 = vld [vmem:[%s511_s5 + $0x18] sm:$0xff] }
   0x3   :  { %v343_v8 = vpack.c.bf16 %v77_v7, %v76_v6  ;;  %v347_v11 = vpack.c.bf16 %v79_v10, %v78_v9  ;;  %v171_v12 = vld [vmem:[%s512_s7] sm:$0xff]  ;;  %v172_v13 = vld [vmem:[%s512_s7 + $0x8] sm:$0xff]  ;;  %v173_v33 = vld [vmem:[%s512_s7 + $0x10] sm:$0xff] }
   0x4   :  { %v42_v4 = vsel %vm41_vm0, %v39_v2, 0.0  ;;  %v45_v5 = vsel %vm41_vm0, %v40_v3, 0.0  ;;  %v351_v14 = vpack.c.bf16 %v172_v13, %v171_v12  ;;  %v48_v15 = vld [vmem:[%s513_s0] sm:$0xff]  ;;  %v49_v20 = vld [vmem:[%s513_s0 + $0x8] sm:$0xff]  ;;  %v174_v34 = vld [vmem:[%s512_s7 + $0x18] sm:$0xff] }
   0x5   :  { %43 = vadd.xlane.f32.xlu0 %v42_v4  ;;  %344 = vmatprep.subr.bf16.mxu0 %v343_v8  ;;  %v50_v16 = vld [vmem:[%s514_s1] sm:$0xff]  ;;  %v51_v21 = vld [vmem:[%s514_s1 + $0x8] sm:$0xff]  ;;  %v355_v35 = vpack.c.bf16 %v174_v34, %v173_v33 }
   0x6   :  { %346 = vmatpush3.bf16.msra.mxu0 %v343_v8  ;;  %352 = vmatprep.subr.bf16.mxu1 %v351_v14  ;;  %v298_v17 = vld [vmem:[%s515_s3] ss:$0 sm:$0xff]  ;;  %v52_v18 = vadd.f32 %v50_v16, %v48_v15  ;;  %v53_v25 = vadd.f32 %v51_v21, %v49_v20 }
   0x7   :  { %348 = vmatprep.subr.bf16.mxu0 %v347_v11  ;;  %354 = vmatpush3.bf16.msra.mxu1 %v351_v14  ;;  %v299_v23 = vld [vmem:[%s516_s4] ss:$0 sm:$0xff] }
   0x8   :  { %356 = vmatprep.subr.bf16.mxu1 %v355_v35  ;;  %v300_v36 = vld [vmem:[%s517_s6] ss:$0 sm:$0xff] }
   0x9   :  { %46 = vadd.xlane.f32.xlu0 %v45_v5  ;;  %v303_v43 = vld [vmem:[%s519_s8] ss:$0 sm:$0xff] }
   0xa   :  { %350 = vmatpush3.bf16.msra.mxu0 %v347_v11  ;;  %v306_v48 = vld [vmem:[%s520_s9] ss:$0 sm:$0xff] }
   0xb   :  { %358 = vmatpush3.bf16.msra.mxu1 %v355_v35 }
  0x92   :  { %v44_v19 = vpop.xlane.xlu0 %43 }
  0x93   :  { %v61_v22 = vmul.f32 %v298_v17, %v44_v19 }
  0x95   :  { %v63_v24 = vadd.f32 %v61_v22, %v52_v18 }
  0x96   :  { %v47_v26 = vpop.xlane.xlu0 %46 }
  0x97   :  { %v62_v27 = vmul.f32 %v298_v17, %v47_v26  ;;  %v72_v28 = vadd.f32 %v299_v23, %v63_v24 }
  0x99   :  { %v64_v29 = vadd.f32 %v62_v27, %v53_v25  ;;  %v74_v30 = vmax.f32 %v72_v28, 0.0 }
  0x9b   :  { %v73_v31 = vadd.f32 %v299_v23, %v64_v29  ;;  %329 = vmatprep.mubr.msk.f32.mxu0 %vm87_vm1, %v74_v30 }
  0x9d   :  { %v75_v32 = vmax.f32 %v73_v31, 0.0 }
  0x9f   :  { %330 = vmatmul.mubr.msk.f32.vlgmr.msra.gmra.mrb[0].mxu0 %vm87_vm1, %v75_v32 }
 0x172   :  { %v331_v37 = vpop.f32.mrb[0].mxu0 }
 0x173   :  { %v166_v38 = vadd.f32 %v331_v37, %v300_v36  ;;  %v160_v39 = vpop.f32.mrb[1].mxu0 }
 0x174   :  { %v161_v40 = vadd.f32 %v300_v36, %v160_v39 }
 0x175   :  { %v170_v41 = vmax.f32 %v166_v38, 0.0 }
 0x176   :  { %v169_v42 = vmax.f32 %v161_v40, 0.0 }
 0x177   :  { %287 = vst.msk [vmem:[%s518_s10 + $0x8] sm:$0xff] %vm87_vm1, %v170_v41 }
 0x178   :  { %286 = vst.msk [vmem:[%s518_s10] sm:$0xff] %vm87_vm1, %v169_v42  ;;  %340 = vmatprep.mubr.msk.f32.mxu1 %vm87_vm1, %v169_v42 }
 0x179   :  { %341 = vmatmul.mubr.msk.f32.vlgmr.msra.gmra.mrb[0].mxu1 %vm87_vm1, %v170_v41 }
 0x24c   :  { %v342_v44 = vpop.f32.mrb[0].mxu1 }
 0x24d   :  { %v260_v45 = vadd.f32 %v342_v44, %v303_v43  ;;  %v254_v46 = vpop.f32.mrb[1].mxu1 }
 0x24e   :  { %v255_v47 = vadd.f32 %v303_v43, %v254_v46 }
 0x24f   :  { %v264_v49 = vmax.f32 %v260_v45, 0.0 }
 0x250   :  { %v263_v50 = vmax.f32 %v255_v47, 0.0 }
 0x251   :  { %v273_v53 = vmul.f32 %v306_v48, %v264_v49 }
 0x252   :  { %v272_v51 = vmul.f32 %v306_v48, %v263_v50 }
 0x253   :  { %v277_v54 = vsel %vm87_vm1, %v273_v53, 0.0 }
 0x254   :  { %v274_v52 = vsel %vm87_vm1, %v272_v51, 0.0 }
 0x255   :  { %275 = vadd.xlane.f32.xlu1 %v274_v52 }
 0x259   :  { %278 = vadd.xlane.f32.xlu1 %v277_v54 }
 0x2e2   :  { %v276_v55 = vpop.xlane.xlu1 %275 }
 0x2e3   :  { %v280_v56 = vmul.f32 %v276_v55, %v422_v0 }
 0x2e5   :  { %v307_v57 = vclamps-f32 %v280_v56, 100.0 }
 0x2e6   :  { %v279_v58 = vpop.xlane.xlu1 %278 }
 0x2e7   :  { %288 = vst.msk [vmem:[%s521_s11] sm:$0xff] %vm41_vm0, %v307_v57  ;;  %v281_v59 = vmul.f32 %v279_v58, %v427_v1 }
 0x2e9   :  { %v308_v60 = vclamps-f32 %v281_v59, 100.0 }
 0x2eb   :  { %289 = vst.msk [vmem:[%s521_s11 + $0x8] sm:$0xff] %vm41_vm0, %v308_v60 }

// kernel: e_gcl_forward.5
= control target key start
LH: loop header
LB: loop body
LE: loop exit
PB: predicated region body
PF: predicated region fallthrough
CT: control target
= control target key end

     0   :  { %v382_v3 = vmov 0.0|0.0   ;;  %vm383_vm0 = vmmov 0   ;;  %v384_v9 = vmov 0.0   ;;  %s487_s0 = inlined_call_operand.vmem [shape: f32[8,16], index: 0, kind: input, shape index: {}]   ;;  %s488_s1 = inlined_call_operand.vmem [shape: f32[8,32], index: 1, kind: input, shape index: {}]   ;;  %s489_s2 = inlined_call_operand.vmem [shape: f32[16,32], index: 2, kind: input, shape index: {}]   ;;  %s490_s3 = inlined_call_operand.vmem [shape: f32[32,32], index: 3, kind: input, shape index: {}]   ;;  %s491_s4 = inlined_call_operand.vmem [shape: f32[1,32], index: 4, kind: input, shape index: {}]   ;;  %s492_s5 = inlined_call_operand.vmem [shape: f32[32,16], index: 5, kind: input, shape index: {}]   ;;  %s493_s6 = inlined_call_operand.vmem [shape: f32[1,16], index: 6, kind: input, shape index: {}]   ;;  %s494_s7 = inlined_call_operand.hbm [shape: f32[8,16], index: 7, kind: output, shape index: {}]  }
   0x1   :  { %v31_v0 = vld [vmem:[%s490_s3] sm:$0xff]  ;;  %v32_v1 = vld [vmem:[%s490_s3 + $0x8] sm:$0xff]  ;;  %339 = vmatprep.subr.bf16.mxu0 %v382_v3  ;;  %345 = vmatprep.subr.bf16.mxu1 %v382_v3  ;;  %v33_v6 = vld [vmem:[%s490_s3 + $0x10] sm:$0xff] }
   0x2   :  { %v28_v2 = vld [vmem:[%s489_s2] sm:$0xff]  ;;  %v340_v4 = vpack.c.bf16 %v32_v1, %v31_v0  ;;  %v29_v5 = vld [vmem:[%s489_s2 + $0x8] sm:$0xff]  ;;  %v34_v7 = vld [vmem:[%s490_s3 + $0x18] sm:$0xff]  ;;  %325 = vmatprep.mubr.msk.f32.mxu1 %vm383_vm0, %v384_v9  ;;  %318 = vmatprep.mubr.msk.f32.mxu0 %vm383_vm0, %v384_v9 }
   0x3   :  { %v346_v8 = vpack.c.bf16 %v29_v5, %v28_v2 }
   0x4   :  { %12 = vsyncpa [#allocation3], 0  ;;  %341 = vmatpush3.bf16.msra.mxu0 %v340_v4  ;;  %v343_v10 = vpack.c.bf16 %v34_v7, %v33_v6  ;;  %v27_v11 = vld [vmem:[%s487_s0] sm:$0xff]  ;;  %vm109_vm1 = vcmask 130048   ;;  %vm35_vm2 = vcmask 261120   ;;  %v193_v14 = vld [vmem:[%s492_s5 + $0x8] sm:$0xff] }
   0x5   :  { %342 = vmatprep.subr.bf16.mxu0 %v382_v3  ;;  %347 = vmatpush3.bf16.msra.mxu1 %v346_v8  ;;  %v30_v12 = vld [vmem:[%s488_s1] sm:$0xff]  ;;  %v194_v16 = vld [vmem:[%s492_s5 + $0x10] sm:$0xff]  ;;  %v195_v17 = vld [vmem:[%s492_s5 + $0x18] sm:$0xff] }
   0x6   :  { %348 = vmatprep.subr.bf16.mxu1 %v382_v3  ;;  %v192_v13 = vld [vmem:[%s492_s5] sm:$0xff]  ;;  %v352_v18 = vpack.c.bf16 %v195_v17, %v194_v16  ;;  %s385_s5 = smov [#allocation2]  }
   0x7   :  { %v349_v15 = vpack.c.bf16 %v193_v14, %v192_v13  ;;  %v294_v22 = vld [vmem:[%s491_s4] ss:$0 sm:$0xff]  ;;  %s284_s25 = sshll.u32 %s385_s5, 4  ;;  %s285_s25 = int_to_ptr.vmem [resolvable:$true] %s284_s25 }
   0x8   :  { %344 = vmatpush3.bf16.msra.mxu0 %v343_v10  ;;  %326 = vmatmul.mubr.msk.f32.vlgmr.msra.gmra.mrb[0].mxu1 %vm109_vm1, %v27_v11  ;;  %v295_v27 = vld [vmem:[%s493_s6] ss:$0 sm:$0xff]  ;;  %s358_s4 = scalar_lea.vmem %s285_s25, 128  ;;  %p363_p1 = scmp.lt.s32.totalorder %s285_s25, %s285_s25 }
   0x9   :  { %336 = vmatprep.mubr.msk.f32.mxu1 %vm383_vm0, %v384_v9  ;;  %350 = vmatpush3.bf16.msra.mxu1 %v349_v15  ;;  %p359_p0 = scmp.ne.s32.totalorder %s285_s25, %s358_s4  ;;  %p364_p2 = scmp.lt.s32.totalorder %s358_s4, %s358_s4 }
   0xa   :  { %351 = vmatprep.subr.bf16.mxu1 %v382_v3 }
   0xb   :  { %319 = vmatmul.mubr.msk.f32.vlgmr.msra.gmra.mrb[0].mxu0 %vm35_vm2, %v30_v12  ;;  %p365_p3 = por %p364_p2, %p363_p1 }
   0xd   :  { %353 = vmatpush3.bf16.msra.mxu1 %v352_v18  ;;  %p366_p4 = pnand %p365_p3, %p359_p0 }
  0xdb   :  { %v179_v19 = vpop.f32.mrb[0].mxu1 }
  0xdc   :  { %v327_v20 = vpop.f32.mrb[1].mxu1 }
  0xde   :  { %v105_v21 = vpop.f32.mrb[0].mxu0 }
  0xdf   :  { %v180_v23 = vadd.f32 %v179_v19, %v105_v21  ;;  %v320_v24 = vpop.f32.mrb[1].mxu0 }
  0xe1   :  { %v190_v25 = vadd.f32 %v294_v22, %v180_v23 }
  0xe3   :  { %v191_v26 = vmax.f32 %v190_v25, 0.0 }
  0xe5   :  { %337 = vmatmul.mubr.msk.f32.vlgmr.msra.gmra.mrb[2].mxu1 %vm35_vm2, %v191_v26 }
 0x1b8   :  { %v272_v28 = vpop.f32.mrb[2].mxu1 }
 0x1b9   :  { %v273_v29 = vadd.f32 %v295_v27, %v272_v28  ;;  %v338_v30 = vpop.f32.mrb[3].mxu1 }
 0x1bb   :  { %v276_v31 = vadd.f32 %v273_v29, %v27_v11 }
 0x1bd   :  { %277 = vst.msk [vmem:[#allocation2] sm:$0xff] %vm109_vm1, %v276_v31 }
 0x1be   :  { %369 = shalt.err (!%p366_p4)
}
 0x1bf   :  { %s370_s6 = scalar_lea.hbm %s494_s7, 128 }
 0x1c0   :  { %p371_p5 = scmp.ne.s32.totalorder %s494_s7, %s370_s6  ;;  %p374_p6 = scmp.lt.u32.totalorder %s370_s6, %s494_s7 }
 0x1c2   :  { %p376_p7 = pnand %p374_p6, %p371_p5 }
 0x1c4   :  { %379 = shalt.err (!%p376_p7)
}
 0x1c5   :  { %287 = dma.vmem_to_hbm [thread:$0]  %s285_s25, 128, %s494_s7, [#allocation3]  }
 0x1c6   :  { %380 = dma.done.wait [#allocation3], 128  }
 0x1c7   :  { %381 = vsyncadd [#allocation3], 4294967168 }
 0x1c8   :  { %291 = vsyncpa [#allocation3], 1 }

</bundles_post_ra>
